<compile_context>
chip_gen: v6e
topology: v6e:2x2x1
jax: 0.10.0
libtpu: 0.0.40
codegen_flags: <defaults>
</compile_context>

<pallas_src>
import numpy as np
import jax
import jax.numpy as jnp
from jax.experimental import pallas as pl
from jax.experimental.pallas import tpu as pltpu

LANES = 128
BN_EPS = 1e-5


def _round_up(x, m):
    return (x + m - 1) // m * m


def _vmem_spec():
    return pl.BlockSpec(memory_space=pltpu.MemorySpace.VMEM)


# ----------------------------------------------------------------------------
# Kernel 1: ConvTranspose2d(k=2, s=2) as a single lane-dense matmul (+ bias)
# ----------------------------------------------------------------------------

def _up_matmul_kernel(x_ref, w_ref, b_ref, o_ref):
    o_ref[...] = (
        jnp.dot(x_ref[...], w_ref[...], preferred_element_type=jnp.float32)
        + b_ref[...]
    )


def _pallas_up_matmul(x_flat, w_mat, b_vec):
    m, k = x_flat.shape
    ncols = w_mat.shape[1]
    kp = _round_up(k, LANES)
    npad = _round_up(ncols, LANES)
    x_p = jnp.pad(x_flat, ((0, 0), (0, kp - k)))
    w_p = jnp.pad(w_mat, ((0, kp - k), (0, npad - ncols)))
    b_p = jnp.pad(b_vec.reshape(1, -1), ((0, 0), (0, npad - ncols)))
    out = pl.pallas_call(
        _up_matmul_kernel,
        out_shape=jax.ShapeDtypeStruct((m, npad), jnp.float32),
        in_specs=[_vmem_spec(), _vmem_spec(), _vmem_spec()],
        out_specs=_vmem_spec(),
        compiler_params=pltpu.CompilerParams(vmem_limit_bytes=32 * 1024 * 1024),
    )(x_p, w_p, b_p)
    return out[:, :ncols]


# ----------------------------------------------------------------------------
# Kernel 2: fused Conv block — conv3x3 + BN + ReLU, twice, in one pallas_call
# ----------------------------------------------------------------------------
# Input layout: the (already upsampled + skip-concatenated) activation is given
# as a flattened, spatially zero-padded NHWC slab of shape (rows, 128):
#   rows = guard + N*(H+2)*(W+2) + guard, channels zero-padded to 128 lanes.
# A 3x3/pad=1 conv then becomes 9 accumulating matmuls on row-shifted slices of
# that slab (shift = (dy-1)*(W+2) + (dx-1)); the guard rows make every shifted
# slice in-bounds.  A (rows,1) mask marks valid (non-padding) pixels so the
# batch statistics are exact and the padding rows are re-zeroed before conv2.

def _fused_conv_block(cat_slab, mask, w1p, w2p, g1p, be1p, g2p, be2p,
                      *, valid_count, rows, guard, w_padded):
    rtot, cp = cat_slab.shape
    shifts = [(dy - 1) * w_padded + (dx - 1) for dy in range(3) for dx in range(3)]
    inv_cnt = 1.0 / float(valid_count)

    def kernel(cat_ref, mask_ref, w1_ref, w2_ref, g1_ref, be1_ref,
               g2_ref, be2_ref, o_ref, zbuf_ref):
        mask_v = mask_ref[...]                                   # (rows, 1)

        # ---- conv1: in-kernel im2col via 9 shifted row-slices (no bias: BN cancels it)
        acc = jnp.zeros((rows, cp), jnp.float32)
        for t, s in enumerate(shifts):
            acc = acc + jnp.dot(cat_ref[pl.ds(guard + s, rows), :], w1_ref[t],
                                preferred_element_type=jnp.float32)

        # ---- BN1: masked single-pass batch stats, folded scale/offset, + ReLU
        ym = acc * mask_v
        mu = jnp.sum(ym, axis=0, keepdims=True) * inv_cnt
        ex2 = jnp.sum(ym * acc, axis=0, keepdims=True) * inv_cnt
        var = ex2 - mu * mu
        scale = g1_ref[...] * jax.lax.rsqrt(var + BN_EPS)
        off = be1_ref[...] - mu * scale
        z = jnp.maximum(acc * scale + off, 0.0) * mask_v          # re-zero pad rows

        # ---- stage z into a guarded VMEM scratch so conv2 reuses shifted slices
        zbuf_ref[pl.ds(0, guard), :] = jnp.zeros((guard, cp), jnp.float32)
        zbuf_ref[pl.ds(guard + rows, rtot - guard - rows), :] = (
            jnp.zeros((rtot - guard - rows, cp), jnp.float32))
        zbuf_ref[pl.ds(guard, rows), :] = z

        # ---- conv2 (bias again dropped — cancelled by BN2)
        acc2 = jnp.zeros((rows, cp), jnp.float32)
        for t, s in enumerate(shifts):
            acc2 = acc2 + jnp.dot(zbuf_ref[pl.ds(guard + s, rows), :], w2_ref[t],
                                  preferred_element_type=jnp.float32)

        # ---- BN2 + ReLU, lane-dense store of the full slab
        ym2 = acc2 * mask_v
        mu2 = jnp.sum(ym2, axis=0, keepdims=True) * inv_cnt
        ex22 = jnp.sum(ym2 * acc2, axis=0, keepdims=True) * inv_cnt
        var2 = ex22 - mu2 * mu2
        scale2 = g2_ref[...] * jax.lax.rsqrt(var2 + BN_EPS)
        off2 = be2_ref[...] - mu2 * scale2
        o_ref[...] = jnp.maximum(acc2 * scale2 + off2, 0.0)

    return pl.pallas_call(
        kernel,
        out_shape=jax.ShapeDtypeStruct((rows, cp), jnp.float32),
        in_specs=[_vmem_spec() for _ in range(8)],
        out_specs=_vmem_spec(),
        scratch_shapes=[pltpu.VMEM((rtot, cp), jnp.float32)],
        compiler_params=pltpu.CompilerParams(vmem_limit_bytes=32 * 1024 * 1024),
    )(cat_slab, mask, w1p, w2p, g1p, be1p, g2p, be2p)


# ----------------------------------------------------------------------------
# Parameter packing (lane padding) helpers
# ----------------------------------------------------------------------------

def _pack_conv_w(wt, cp):
    """torch (Cout, Cin, 3, 3) -> (9, CPpad, CPpad) per-tap matrices."""
    cout, cin = wt.shape[0], wt.shape[1]
    wm = jnp.transpose(wt, (2, 3, 1, 0)).reshape(9, cin, cout)
    return jnp.pad(wm, ((0, 0), (0, cp - cin), (0, cp - cout)))


def _pack_vec(v, cp):
    return jnp.pad(v.reshape(1, -1), ((0, 0), (0, cp - v.shape[0])))


# ----------------------------------------------------------------------------
# Public forward (NCHW in / NCHW out, like the PyTorch module)
# ----------------------------------------------------------------------------

def decoder_forward(x_nchw, skip_nchw, params):
    n, cin, hi, wi = x_nchw.shape
    cout = params["w_up"].shape[1]
    h, w = 2 * hi, 2 * wi
    hp, wp = h + 2, w + 2                       # spatially padded (conv pad=1)
    cpad = _round_up(2 * cout, LANES)           # lane-dense channel padding

    # ---- ConvTranspose2d(k=2, s=2, p=0): pointwise matmul (Pallas) + shuffle (glue)
    x_flat = jnp.transpose(x_nchw, (0, 2, 3, 1)).reshape(n * hi * wi, cin)
    w_up = jnp.transpose(params["w_up"], (0, 2, 3, 1)).reshape(cin, 4 * cout)
    b_up = jnp.tile(params["b_up"], 4)
    y4 = _pallas_up_matmul(x_flat, w_up, b_up)                    # (n*hi*wi, 4*cout)
    y = y4.reshape(n, hi, wi, 2, 2, cout)
    y = jnp.transpose(y, (0, 1, 3, 2, 4, 5)).reshape(n, h, w, cout)

    # ---- concat with skip, zero spatial pad, lane pad, flatten, add row guards
    skip_nhwc = jnp.transpose(skip_nchw, (0, 2, 3, 1))            # (n,h,w,cout)
    cat = jnp.concatenate([y, skip_nhwc], axis=-1)                # (n,h,w,2*cout)
    cat = jnp.pad(cat, ((0, 0), (1, 1), (1, 1), (0, cpad - 2 * cout)))
    rows = n * hp * wp
    guard = _round_up(wp + 1, 8)                                  # covers max |shift|
    cat_slab = jnp.pad(cat.reshape(rows, cpad), ((guard, guard), (0, 0)))

    # validity mask (1 on real pixels, 0 on spatial padding rows)
    mask = jnp.pad(jnp.ones((n, h, w, 1), jnp.float32),
                   ((0, 0), (1, 1), (1, 1), (0, 0))).reshape(rows, 1)

    # weights / BN affine, lane padded.  NOTE: conv biases b1/b2 are intentionally
    # NOT used — they are exactly cancelled by the BatchNorm mean subtraction.
    w1p = _pack_conv_w(params["w1"], cpad)
    w2p = _pack_conv_w(params["w2"], cpad)
    g1p, be1p = _pack_vec(params["g1"], cpad), _pack_vec(params["be1"], cpad)
    g2p, be2p = _pack_vec(params["g2"], cpad), _pack_vec(params["be2"], cpad)

    out_slab = _fused_conv_block(cat_slab, mask, w1p, w2p, g1p, be1p, g2p, be2p,
                                 valid_count=n * h * w, rows=rows,
                                 guard=guard, w_padded=wp)

    out = out_slab.reshape(n, hp, wp, cpad)[:, 1:h + 1, 1:w + 1, :cout]
    return jnp.transpose(out, (0, 3, 1, 2))                       # back to NCHW


# ----------------------------------------------------------------------------
# Pure-JAX reference (independent path: lax.conv / einsum) for verification
# ----------------------------------------------------------------------------

def _ref_decoder(x, skip, p):
    n, cin, hi, wi = x.shape
    cout = p["w_up"].shape[1]
    up = jnp.einsum("ncij,cdab->ndiajb", x, p["w_up"]).reshape(n, cout, 2 * hi, 2 * wi)
    up = up + p["b_up"][None, :, None, None]
    cat = jnp.concatenate([up, skip], axis=1)

    def conv_bn_relu(z, wt, b, g, be):
        y = jax.lax.conv_general_dilated(
            z, wt, (1, 1), ((1, 1), (1, 1)),
            dimension_numbers=("NCHW", "OIHW", "NCHW"),
            precision=jax.lax.Precision.HIGHEST,
        ) + b[None, :, None, None]
        mu = jnp.mean(y, axis=(0, 2, 3), keepdims=True)
        var = jnp.mean((y - mu) ** 2, axis=(0, 2, 3), keepdims=True)
        y = (y - mu) * jax.lax.rsqrt(var + BN_EPS)
        y = y * g[None, :, None, None] + be[None, :, None, None]
        return jnp.maximum(y, 0.0)

    z = conv_bn_relu(cat, p["w1"], p["b1"], p["g1"], p["be1"])
    z = conv_bn_relu(z, p["w2"], p["b2"], p["g2"], p["be2"])
    return z


# ----------------------------------------------------------------------------
# Main
# ----------------------------------------------------------------------------

if __name__ == "__main__":
    IN_CH, OUT_CH = 8, 4          # Decoder(in_channels=8, out_channels=4)
    N, HI, WI = 2, 8, 8           # x: (N, IN_CH, 8, 8) -> upsampled to 16x16

    key = jax.random.PRNGKey(0)
    ks = jax.random.split(key, 12)

    params = {
        # ConvTranspose2d(in=8, out=4, k=2, s=2): weight (Cin, Cout, 2, 2)
        "w_up": 0.1 * jax.random.normal(ks[0], (IN_CH, OUT_CH, 2, 2), jnp.float32),
        "b_up": 0.1 * jax.random.normal(ks[1], (OUT_CH,), jnp.float32),
        # Conv2d(2*out, out, 3, padding=1)
        "w1": 0.1 * jax.random.normal(ks[2], (OUT_CH, 2 * OUT_CH, 3, 3), jnp.float32),
        "b1": 0.1 * jax.random.normal(ks[3], (OUT_CH,), jnp.float32),
        "g1": 1.0 + 0.1 * jax.random.normal(ks[4], (OUT_CH,), jnp.float32),
        "be1": 0.1 * jax.random.normal(ks[5], (OUT_CH,), jnp.float32),
        # Conv2d(out, out, 3, padding=1)
        "w2": 0.1 * jax.random.normal(ks[6], (OUT_CH, OUT_CH, 3, 3), jnp.float32),
        "b2": 0.1 * jax.random.normal(ks[7], (OUT_CH,), jnp.float32),
        "g2": 1.0 + 0.1 * jax.random.normal(ks[8], (OUT_CH,), jnp.float32),
        "be2": 0.1 * jax.random.normal(ks[9], (OUT_CH,), jnp.float32),
    }

    x = jax.random.normal(ks[10], (N, IN_CH, HI, WI), jnp.float32)            # NCHW
    skip_x = jax.random.normal(ks[11], (N, OUT_CH, 2 * HI, 2 * WI), jnp.float32)

    out = jax.block_until_ready(decoder_forward(x, skip_x, params))
    ref = jax.block_until_ready(_ref_decoder(x, skip_x, params))

    assert out.shape == (N, OUT_CH, 2 * HI, 2 * WI), out.shape
    np.testing.assert_allclose(np.asarray(out), np.asarray(ref), rtol=1e-3, atol=2e-3)

    print("KERNEL_OK")
</pallas_src>

<mosaic_0001>
module attributes {stable_mosaic.version = 11 : i64} {
  func.func @_up_matmul_kernel(%arg0: memref<128x128xf32, #tpu.memory_space<vmem>>, %arg1: memref<128x128xf32, #tpu.memory_space<vmem>>, %arg2: memref<1x128xf32, #tpu.memory_space<vmem>>, %arg3: memref<128x128xf32, #tpu.memory_space<vmem>>) attributes {dimension_semantics = [], scalar_prefetch = 0 : i64, scratch_operands = 0 : i64, tpu.core_type = #tpu.core_type<tc>} {
    %c0 = arith.constant 0 : index
    %c0_0 = arith.constant 0 : index
    %0 = vector.load %arg0[%c0, %c0_0] : memref<128x128xf32, #tpu.memory_space<vmem>>, vector<128x128xf32>
    %c0_1 = arith.constant 0 : index
    %c0_2 = arith.constant 0 : index
    %1 = vector.load %arg1[%c0_1, %c0_2] : memref<128x128xf32, #tpu.memory_space<vmem>>, vector<128x128xf32>
    %cst = arith.constant dense<0.000000e+00> : vector<128x128xf32>
    %2 = tpu.matmul %0, %1, %cst {dimension_numbers = #tpu.dot_dimension_numbers<[1], [0], [0], [1], [0, 0, 1, 1], [], []>} : vector<128x128xf32>, vector<128x128xf32>, vector<128x128xf32> -> vector<128x128xf32>
    %c0_3 = arith.constant 0 : index
    %c0_4 = arith.constant 0 : index
    %3 = vector.load %arg2[%c0_3, %c0_4] : memref<1x128xf32, #tpu.memory_space<vmem>>, vector<1x128xf32>
    %4 = vector.broadcast %3 : vector<1x128xf32> to vector<128x128xf32>
    %5 = arith.addf %2, %4 : vector<128x128xf32>
    %c0_5 = arith.constant 0 : index
    %c0_6 = arith.constant 0 : index
    %6 = vector.load %arg3[%c0_5, %c0_6] : memref<128x128xf32, #tpu.memory_space<vmem>>, vector<128x128xf32>
    tpu.vector_store %arg3[%c0_5, %c0_6], %5 {strides = array<i32>} : memref<128x128xf32, #tpu.memory_space<vmem>>, vector<128x128xf32>,
    return
  }
}

</mosaic_0001>

<bundles_post_ra>
// kernel: tpu_custom_call.1
= control target key start
LH: loop header
LB: loop body
LE: loop exit
PB: predicated region body
PF: predicated region fallthrough
CT: control target
= control target key end

     0   :  { %8 = vsyncpa [#allocation3], 0  ;;  %s499_s0 = inlined_call_operand.hbm [shape: f32[128,128], index: 0, kind: input, shape index: {}]   ;;  %s500_s1 = inlined_call_operand.hbm [shape: f32[128,128], index: 1, kind: input, shape index: {}]   ;;  %s501_s2 = inlined_call_operand.vmem [shape: f32[1,128], index: 2, kind: input, shape index: {}]   ;;  %s502_s3 = inlined_call_operand.hbm [shape: f32[128,128], index: 3, kind: output, shape index: {}]  }
   0x1   :  { %9 = vsyncpa [#allocation6], 0 }
   0x2   :  { %10 = vsyncpa [#allocation4], 0  ;;  %s453_s12 = smov [#allocation2]  }
   0x3   :  { %s16_s13 = sshll.u32 %s453_s12, 4  ;;  %s17_s13 = int_to_ptr.vmem [resolvable:$true] %s16_s13 }
   0x4   :  { %s395_s14 = scalar_lea.vmem %s17_s13, 2048  ;;  %p400_p1 = scmp.lt.s32.totalorder %s17_s13, %s17_s13 }
   0x5   :  { %p396_p0 = scmp.ne.s32.totalorder %s17_s13, %s395_s14  ;;  %p401_p2 = scmp.lt.s32.totalorder %s395_s14, %s395_s14 }
   0x7   :  { %p402_p3 = por %p401_p2, %p400_p1 }
   0x9   :  { %p403_p4 = pnand %p402_p3, %p396_p0 }
   0xb   :  { %406 = shalt.err (!%p403_p4)
}
   0xc   :  { %s454_s15 = smov 128   ;;  %s455_s16 = smov 8  }
   0xd   :  { %22 = dma.hbm_to_vmem [thread:$0]  %s499_s0, 2048, %s17_s13, [#allocation3], %s454_s15, %s454_s15, %s455_s16  }
   0xe   :  { %s456_s19 = smov [#allocation5]  }
   0xf   :  { %s28_s20 = sshll.u32 %s456_s19, 4  ;;  %s29_s20 = int_to_ptr.vmem [resolvable:$true] %s28_s20 }
  0x10   :  { %s415_s21 = scalar_lea.vmem %s29_s20, 2048  ;;  %p420_p6 = scmp.lt.s32.totalorder %s29_s20, %s29_s20 }
  0x11   :  { %p416_p5 = scmp.ne.s32.totalorder %s29_s20, %s415_s21  ;;  %p421_p7 = scmp.lt.s32.totalorder %s415_s21, %s415_s21 }
  0x13   :  { %p422_p8 = por %p421_p7, %p420_p6 }
  0x15   :  { %p423_p9 = pnand %p422_p8, %p416_p5 }
  0x17   :  { %426 = shalt.err (!%p423_p9)
}
  0x18   :  { %34 = dma.hbm_to_vmem [thread:$0]  %s500_s1, 2048, %s29_s20, [#allocation6], %s454_s15, %s454_s15, %s455_s16  }
  0x19   :  { %447 = dma.done.wait [#allocation3], 2048  }
  0x1a   :  { %448 = vsyncadd [#allocation3], 4294965248 }
  0x1b   :  { %449 = dma.done.wait [#allocation6], 2048  }
  0x1c   :  { %450 = vsyncadd [#allocation6], 4294965248  ;;  %v74_v0 = vld [vmem:[#allocation5 + $0x78] sm:$0xff]  ;;  %v73_v1 = vld [vmem:[#allocation5 + $0x70] sm:$0xff] }
  0x1d   :  { %294 = vmatprep.subr.mxu0 %v74_v0  ;;  %350 = vmatprep.subr.mxu1 %v74_v0  ;;  %v72_v2 = vld [vmem:[#allocation5 + $0x68] sm:$0xff]  ;;  %v71_v3 = vld [vmem:[#allocation5 + $0x60] sm:$0xff]  ;;  %v70_v4 = vld [vmem:[#allocation5 + $0x58] sm:$0xff] }
  0x1e   :  { %295 = vmatpush3.msra.mxu0 %v74_v0  ;;  %366 = vmatpush3.msra.mxu1 %v74_v0  ;;  %v69_v5 = vld [vmem:[#allocation5 + $0x50] sm:$0xff]  ;;  %v68_v6 = vld [vmem:[#allocation5 + $0x48] sm:$0xff]  ;;  %v67_v7 = vld [vmem:[#allocation5 + $0x40] sm:$0xff] }
  0x1f   :  { %296 = vmatprep.subr.mxu0 %v73_v1  ;;  %351 = vmatprep.subr.mxu1 %v73_v1  ;;  %v66_v8 = vld [vmem:[#allocation5 + $0x38] sm:$0xff]  ;;  %v65_v9 = vld [vmem:[#allocation5 + $0x30] sm:$0xff]  ;;  %v64_v10 = vld [vmem:[#allocation5 + $0x28] sm:$0xff] }
  0x20   :  { %297 = vmatpush3.msra.mxu0 %v73_v1  ;;  %367 = vmatpush3.msra.mxu1 %v73_v1  ;;  %v63_v11 = vld [vmem:[#allocation5 + $0x20] sm:$0xff]  ;;  %v62_v12 = vld [vmem:[#allocation5 + $0x18] sm:$0xff]  ;;  %v61_v13 = vld [vmem:[#allocation5 + $0x10] sm:$0xff] }
  0x21   :  { %298 = vmatprep.subr.mxu0 %v72_v2  ;;  %352 = vmatprep.subr.mxu1 %v72_v2  ;;  %v60_v14 = vld [vmem:[#allocation5 + $0x8] sm:$0xff]  ;;  %v59_v15 = vld [vmem:[#allocation5] sm:$0xff]  ;;  %v45_v20 = vld [vmem:[#allocation2 + $0x10] sm:$0xff] }
  0x22   :  { %299 = vmatpush3.msra.mxu0 %v72_v2  ;;  %368 = vmatpush3.msra.mxu1 %v72_v2  ;;  %v43_v16 = vld [vmem:[#allocation2] sm:$0xff]  ;;  %v44_v18 = vld [vmem:[#allocation2 + $0x8] sm:$0xff]  ;;  %v53_v21 = vld [vmem:[#allocation2 + $0x50] sm:$0xff] }
  0x23   :  { %300 = vmatprep.subr.mxu0 %v71_v3  ;;  %353 = vmatprep.subr.mxu1 %v71_v3  ;;  %v51_v17 = vld [vmem:[#allocation2 + $0x40] sm:$0xff]  ;;  %v52_v19 = vld [vmem:[#allocation2 + $0x48] sm:$0xff]  ;;  %v46_v22 = vld [vmem:[#allocation2 + $0x18] sm:$0xff] }
  0x24   :  { %301 = vmatpush3.msra.mxu0 %v71_v3  ;;  %369 = vmatpush3.msra.mxu1 %v71_v3  ;;  %v54_v23 = vld [vmem:[#allocation2 + $0x58] sm:$0xff]  ;;  %v47_v24 = vld [vmem:[#allocation2 + $0x20] sm:$0xff]  ;;  %v48_v26 = vld [vmem:[#allocation2 + $0x28] sm:$0xff] }
  0x25   :  { %302 = vmatprep.subr.mxu0 %v70_v4  ;;  %354 = vmatprep.subr.mxu1 %v70_v4  ;;  %v55_v25 = vld [vmem:[#allocation2 + $0x60] sm:$0xff]  ;;  %v56_v27 = vld [vmem:[#allocation2 + $0x68] sm:$0xff]  ;;  %v49_v28 = vld [vmem:[#allocation2 + $0x30] sm:$0xff] }
  0x26   :  { %303 = vmatpush3.msra.mxu0 %v70_v4  ;;  %370 = vmatpush3.msra.mxu1 %v70_v4  ;;  %v57_v29 = vld [vmem:[#allocation2 + $0x70] sm:$0xff]  ;;  %v50_v30 = vld [vmem:[#allocation2 + $0x38] sm:$0xff]  ;;  %v261_v32 = vld [vmem:[%s501_s2] ss:$0 sm:$0xff]  ;;  %s457_s2 = smov [#allocation7]  }
  0x27   :  { %304 = vmatprep.subr.mxu0 %v69_v5  ;;  %355 = vmatprep.subr.mxu1 %v69_v5  ;;  %v58_v31 = vld [vmem:[#allocation2 + $0x78] sm:$0xff]  ;;  %s248_s24 = sshll.u32 %s457_s2, 4  ;;  %s249_s24 = int_to_ptr.vmem [resolvable:$true] %s248_s24 }
  0x28   :  { %305 = vmatpush3.msra.mxu0 %v69_v5  ;;  %371 = vmatpush3.msra.mxu1 %v69_v5  ;;  %s427_s25 = scalar_lea.vmem %s249_s24, 2048  ;;  %p432_p11 = scmp.lt.s32.totalorder %s249_s24, %s249_s24 }
  0x29   :  { %306 = vmatprep.subr.mxu0 %v68_v6  ;;  %356 = vmatprep.subr.mxu1 %v68_v6  ;;  %p428_p10 = scmp.ne.s32.totalorder %s249_s24, %s427_s25  ;;  %p433_p12 = scmp.lt.s32.totalorder %s427_s25, %s427_s25 }
  0x2a   :  { %307 = vmatpush3.msra.mxu0 %v68_v6  ;;  %372 = vmatpush3.msra.mxu1 %v68_v6 }
  0x2b   :  { %308 = vmatprep.subr.mxu0 %v67_v7  ;;  %357 = vmatprep.subr.mxu1 %v67_v7  ;;  %p434_p13 = por %p433_p12, %p432_p11 }
  0x2c   :  { %309 = vmatpush3.msra.mxu0 %v67_v7  ;;  %373 = vmatpush3.msra.mxu1 %v67_v7 }
  0x2d   :  { %310 = vmatprep.subr.mxu0 %v66_v8  ;;  %358 = vmatprep.subr.mxu1 %v66_v8  ;;  %p435_p0 = pnand %p434_p13, %p428_p10 }
  0x2e   :  { %311 = vmatpush3.msra.mxu0 %v66_v8  ;;  %374 = vmatpush3.msra.mxu1 %v66_v8 }
  0x2f   :  { %312 = vmatprep.subr.mxu0 %v65_v9  ;;  %359 = vmatprep.subr.mxu1 %v65_v9 }
  0x30   :  { %313 = vmatpush3.msra.mxu0 %v65_v9  ;;  %375 = vmatpush3.msra.mxu1 %v65_v9 }
  0x31   :  { %314 = vmatprep.subr.mxu0 %v64_v10  ;;  %360 = vmatprep.subr.mxu1 %v64_v10 }
  0x32   :  { %315 = vmatpush3.msra.mxu0 %v64_v10  ;;  %376 = vmatpush3.msra.mxu1 %v64_v10 }
  0x33   :  { %316 = vmatprep.subr.mxu0 %v63_v11  ;;  %361 = vmatprep.subr.mxu1 %v63_v11 }
  0x34   :  { %317 = vmatpush3.msra.mxu0 %v63_v11  ;;  %377 = vmatpush3.msra.mxu1 %v63_v11 }
  0x35   :  { %318 = vmatprep.subr.mxu0 %v62_v12  ;;  %362 = vmatprep.subr.mxu1 %v62_v12 }
  0x36   :  { %319 = vmatpush3.msra.mxu0 %v62_v12  ;;  %378 = vmatpush3.msra.mxu1 %v62_v12 }
  0x37   :  { %320 = vmatprep.subr.mxu0 %v61_v13  ;;  %363 = vmatprep.subr.mxu1 %v61_v13 }
  0x38   :  { %321 = vmatpush3.msra.mxu0 %v61_v13  ;;  %379 = vmatpush3.msra.mxu1 %v61_v13 }
  0x39   :  { %322 = vmatprep.subr.mxu0 %v60_v14  ;;  %364 = vmatprep.subr.mxu1 %v60_v14 }
  0x3a   :  { %323 = vmatpush3.msra.mxu0 %v60_v14  ;;  %380 = vmatpush3.msra.mxu1 %v60_v14 }
  0x3b   :  { %324 = vmatprep.subr.mxu0 %v59_v15  ;;  %365 = vmatprep.subr.mxu1 %v59_v15 }
  0x3c   :  { %325 = vmatpush3.msra.mxu0 %v59_v15  ;;  %381 = vmatpush3.msra.mxu1 %v59_v15 }
  0x3d   :  { %326 = vmatprep.mubr.f32.mxu0 %v43_v16  ;;  %338 = vmatprep.mubr.f32.mxu1 %v51_v17 }
  0x3e   :  { %327 = vmatmul.mubr.f32.vlgmr.msra.gmra.mxu0 %v44_v18  ;;  %339 = vmatmul.mubr.f32.vlgmr.msra.gmra.mxu1 %v52_v19 }
  0x3f   :  { %329 = vmatprep.mubr.f32.mxu0 %v45_v20  ;;  %341 = vmatprep.mubr.f32.mxu1 %v53_v21 }
  0x42   :  { %330 = vmatmul.mubr.f32.gmra.mxu0 %v46_v22  ;;  %342 = vmatmul.mubr.f32.gmra.mxu1 %v54_v23 }
  0x43   :  { %332 = vmatprep.mubr.f32.mxu0 %v47_v24  ;;  %344 = vmatprep.mubr.f32.mxu1 %v55_v25 }
  0x46   :  { %333 = vmatmul.mubr.f32.gmra.mxu0 %v48_v26  ;;  %345 = vmatmul.mubr.f32.gmra.mxu1 %v56_v27 }
  0x47   :  { %335 = vmatprep.mubr.f32.mxu0 %v49_v28  ;;  %347 = vmatprep.mubr.f32.mxu1 %v57_v29 }
  0x4a   :  { %336 = vmatmul.mubr.f32.gmra.mxu0 %v50_v30  ;;  %348 = vmatmul.mubr.f32.gmra.mxu1 %v58_v31 }
  0xfe   :  { %v328_v33 = vpop.f32.mrf.mxu0  ;;  %v340_v34 = vpop.f32.mrf.mxu1 }
  0xff   :  { %v154_v35 = vadd.f32 %v328_v33, %v261_v32  ;;  %v194_v36 = vadd.f32 %v340_v34, %v261_v32 }
 0x100   :  { %v148_v37 = vpop.f32.mrf.mxu0  ;;  %v188_v38 = vpop.f32.mrf.mxu1 }
 0x101   :  { %228 = vst [vmem:[#allocation7 + $0x8] sm:$0xff] %v154_v35  ;;  %236 = vst [vmem:[#allocation7 + $0x48] sm:$0xff] %v194_v36  ;;  %v149_v39 = vadd.f32 %v261_v32, %v148_v37  ;;  %v189_v40 = vadd.f32 %v261_v32, %v188_v38 }
 0x102   :  { %v331_v41 = vpop.f32.mrf.mxu0  ;;  %v343_v42 = vpop.f32.mrf.mxu1 }
 0x103   :  { %227 = vst [vmem:[#allocation7] sm:$0xff] %v149_v39  ;;  %235 = vst [vmem:[#allocation7 + $0x40] sm:$0xff] %v189_v40  ;;  %v164_v43 = vadd.f32 %v331_v41, %v261_v32  ;;  %v204_v44 = vadd.f32 %v343_v42, %v261_v32 }
 0x104   :  { %v158_v45 = vpop.f32.mrf.mxu0  ;;  %v198_v46 = vpop.f32.mrf.mxu1 }
 0x105   :  { %230 = vst [vmem:[#allocation7 + $0x18] sm:$0xff] %v164_v43  ;;  %238 = vst [vmem:[#allocation7 + $0x58] sm:$0xff] %v204_v44  ;;  %v159_v47 = vadd.f32 %v261_v32, %v158_v45  ;;  %v199_v48 = vadd.f32 %v261_v32, %v198_v46 }
 0x106   :  { %v334_v49 = vpop.f32.mrf.mxu0  ;;  %v346_v50 = vpop.f32.mrf.mxu1 }
 0x107   :  { %229 = vst [vmem:[#allocation7 + $0x10] sm:$0xff] %v159_v47  ;;  %237 = vst [vmem:[#allocation7 + $0x50] sm:$0xff] %v199_v48  ;;  %v174_v51 = vadd.f32 %v334_v49, %v261_v32  ;;  %v214_v52 = vadd.f32 %v346_v50, %v261_v32 }
 0x108   :  { %v168_v53 = vpop.f32.mrf.mxu0  ;;  %v208_v54 = vpop.f32.mrf.mxu1 }
 0x109   :  { %232 = vst [vmem:[#allocation7 + $0x28] sm:$0xff] %v174_v51  ;;  %240 = vst [vmem:[#allocation7 + $0x68] sm:$0xff] %v214_v52  ;;  %v169_v55 = vadd.f32 %v261_v32, %v168_v53  ;;  %v209_v56 = vadd.f32 %v261_v32, %v208_v54 }
 0x10a   :  { %v337_v57 = vpop.f32.mrf.mxu0  ;;  %v349_v58 = vpop.f32.mrf.mxu1 }
 0x10b   :  { %231 = vst [vmem:[#allocation7 + $0x20] sm:$0xff] %v169_v55  ;;  %239 = vst [vmem:[#allocation7 + $0x60] sm:$0xff] %v209_v56  ;;  %v184_v59 = vadd.f32 %v337_v57, %v261_v32  ;;  %v224_v60 = vadd.f32 %v349_v58, %v261_v32 }
 0x10c   :  { %v178_v61 = vpop.f32.mrf.mxu0  ;;  %v218_v62 = vpop.f32.mrf.mxu1 }
 0x10d   :  { %234 = vst [vmem:[#allocation7 + $0x38] sm:$0xff] %v184_v59  ;;  %242 = vst [vmem:[#allocation7 + $0x78] sm:$0xff] %v224_v60  ;;  %v179_v63 = vadd.f32 %v261_v32, %v178_v61  ;;  %v219_v0 = vadd.f32 %v261_v32, %v218_v62 }
 0x10f   :  { %233 = vst [vmem:[#allocation7 + $0x30] sm:$0xff] %v179_v63  ;;  %241 = vst [vmem:[#allocation7 + $0x70] sm:$0xff] %v219_v0 }
 0x110   :  { %438 = shalt.err (!%p435_p0)
}
 0x111   :  { %254 = dma.vmem_to_hbm [thread:$0]  %s249_s24, 2048, %s502_s3, [#allocation4], %s454_s15, %s454_s15, %s455_s16  }
 0x112   :  { %451 = dma.done.wait [#allocation4], 2048  }
 0x113   :  { %452 = vsyncadd [#allocation4], 4294965248 }
 0x114   :  { %258 = vsyncpa [#allocation3], 1 }
 0x115   :  { %259 = vsyncpa [#allocation6], 1 }
 0x116   :  { %260 = vsyncpa [#allocation4], 1 }

</bundles_post_ra>
